<compile_context>
chip_gen: v7x
topology: tpu7x:2x2x1
jax: 0.10.0
libtpu: 0.0.40
codegen_flags: <defaults>
</compile_context>

<pallas_src>
import functools
import math

import jax
import jax.numpy as jnp
from jax.experimental import pallas as pl
from jax.experimental.pallas import tpu as pltpu

_INV_SQRT2 = 1.0 / math.sqrt(2.0)
_SQRT_2_OVER_PI = math.sqrt(2.0 / math.pi)
_MiB = 1 << 20


# --------------------------------------------------------------------------- kernel
def _make_kernel(act):
    def kernel(x_ref, w_ref, b_ref, o_ref):
        # Per-tile cast of the activation to the MXU dtype *inside* the kernel
        # (no extra HBM pass for a wrapper-side astype).  f32 accumulation.
        x = x_ref[...].astype(w_ref.dtype)
        h = jnp.dot(x, w_ref[...], preferred_element_type=jnp.float32)
        h = h + b_ref[...]
        if act == "gelu_tanh":
            # tanh-form GELU: transcendental goes to the EUP slot; keeps the
            # epilogue off the VALU on v6e/v7x.  Opt-in (~1e-3 abs deviation).
            inner = _SQRT_2_OVER_PI * (h + 0.044715 * (h * h * h))
            g = 0.5 * h * (1.0 + jnp.tanh(inner))
        else:
            # Exact GELU (module semantics): x * 0.5 * (1 + erf(x / sqrt(2))).
            g = h * (0.5 * (1.0 + jax.lax.erf(h * _INV_SQRT2)))
        o_ref[...] = g.astype(o_ref.dtype)

    return kernel


# --------------------------------------------------------------------------- planning
def _tpu_vmem_capacity_bytes():
    try:
        return int(pltpu.get_tpu_info().vmem_capacity_bytes)
    except Exception:
        return 64 * _MiB  # conservative (v7x-sized) fallback


def _pick_tile(dim, target, align, prefer_even_steps=False):
    """Largest multiple of `align` dividing `dim` that is <= target (searching
    up to 4*target before the whole-axis fallback).  Optionally prefer a tile
    giving an even number of grid steps (v7x: keep both TensorCores busy)."""
    if dim % align:
        # TODO(synk): cdiv grid + masked stores for awkwardly factored dims.
        return dim
    divisors = [t for t in range(align, dim + 1, align) if dim % t == 0]
    down = [t for t in divisors if t <= target]
    up = [t for t in divisors if target < t <= 4 * target]
    candidates = down or up or [dim]
    if prefer_even_steps:
        even = [t for t in candidates if (dim // t) % 2 == 0]
        if even:
            return max(even)
    return max(candidates)


@functools.lru_cache(maxsize=None)
def _build_fn(M, K, N, tm, tn, x_dtype, w_dtype, out_dtype, act,
              weight_resident, single_buffer_resident, vmem_limit):
    out_dt = jnp.dtype(out_dtype)
    x_bytes = jnp.dtype(x_dtype).itemsize
    w_bytes = jnp.dtype(w_dtype).itemsize
    o_bytes = out_dt.itemsize
    kernel = _make_kernel(act)

    cost = pl.CostEstimate(
        flops=2 * M * N * K + 8 * M * N,
        transcendentals=M * N,
        bytes_accessed=M * K * x_bytes + K * N * w_bytes + N * 4 + M * N * o_bytes,
    )

    if weight_resident:
        # 1-D grid over M: weight + bias resident in VMEM (DMA'd once, single
        # buffer), x / out make one HBM pass, output stores are full-N
        # lane-dense.  "parallel" lets v7x shard the M axis across both TCs.
        if single_buffer_resident:
            w_spec = pl.BlockSpec((K, N), lambda i: (0, 0), pipeline_mode=pl.Buffered(1))
            b_spec = pl.BlockSpec((1, N), lambda i: (0, 0), pipeline_mode=pl.Buffered(1))
        else:
            w_spec = pl.BlockSpec((K, N), lambda i: (0, 0))
            b_spec = pl.BlockSpec((1, N), lambda i: (0, 0))
        grid_spec = pltpu.PrefetchScalarGridSpec(
            num_scalar_prefetch=0,
            grid=(M // tm,),
            in_specs=[pl.BlockSpec((tm, K), lambda i: (i, 0)), w_spec, b_spec],
            out_specs=pl.BlockSpec((tm, N), lambda i: (i, 0)),
        )
        dim_sem = ("parallel",)
    else:
        # 2-D grid, N as the slow (outer) axis: each weight/bias tile DMA'd
        # exactly once; x re-read N//tn times.
        grid_spec = pltpu.PrefetchScalarGridSpec(
            num_scalar_prefetch=0,
            grid=(N // tn, M // tm),
            in_specs=[
                pl.BlockSpec((tm, K), lambda j, i: (i, 0)),
                pl.BlockSpec((K, tn), lambda j, i: (0, j)),
                pl.BlockSpec((1, tn), lambda j, i: (0, j)),
            ],
            out_specs=pl.BlockSpec((tm, tn), lambda j, i: (i, j)),
        )
        dim_sem = ("parallel", "parallel")

    call = pl.pallas_call(
        kernel,
        out_shape=jax.ShapeDtypeStruct((M, N), out_dt),
        grid_spec=grid_spec,
        compiler_params=pltpu.CompilerParams(
            dimension_semantics=dim_sem,
            vmem_limit_bytes=int(vmem_limit),
        ),
        cost_estimate=cost,
    )
    return jax.jit(call)


# --------------------------------------------------------------------------- public API
def prepare_params(weight_out_in, bias, compute_dtype=jnp.bfloat16):
    """One-time ("model init") param prep: nn.Linear [out,in] -> [in,out] bf16,
    bias -> f32 [1, N].  Avoids per-call weight casts in the forward path."""
    w_kn = jnp.asarray(weight_out_in).T.astype(compute_dtype)
    b2d = jnp.asarray(bias).astype(jnp.float32).reshape(1, -1)
    return w_kn, b2d


def bert_intermediate(hidden_states, weight_kn, bias2d, *, tm=None, tn=None,
                      out_dtype=jnp.bfloat16, act="gelu_erf"):
    """hidden_states: [B, S, K] (any float dtype); weight_kn: [K, N] (pre-cast,
    see prepare_params); bias2d: [1, N] f32  ->  [B, S, N] in out_dtype."""
    B, S, K = hidden_states.shape
    Kw, N = weight_kn.shape
    assert K == Kw and bias2d.shape == (1, N)
    M = B * S
    out_dt = jnp.dtype(out_dtype)

    vmem_cap = _tpu_vmem_capacity_bytes()
    big_vmem = vmem_cap >= 100 * _MiB        # v5e / v6e: 128 MiB VMEM per TC
    two_tc = not big_vmem                    # v7x heuristic: 64 MiB, 2 TCs/chip

    x_bytes = jnp.dtype(hidden_states.dtype).itemsize
    w_bytes = jnp.dtype(weight_kn.dtype).itemsize
    o_bytes = out_dt.itemsize

    if tm is None:
        tm = _pick_tile(M, 512 if big_vmem else 256, 16, prefer_even_steps=two_tc)
    if tn is None:
        tn = _pick_tile(N, 512, 128)
    assert M % tm == 0 and N % tn == 0

    # VMEM estimate for the weight-resident path: double-buffered x / out,
    # SINGLE-buffered resident W / bias, + ~1 f32 tile of epilogue headroom.
    resident_est = (2 * tm * K * x_bytes + K * N * w_bytes + N * 4
                    + 2 * tm * N * o_bytes + tm * N * 4)
    resident_budget = (88 if big_vmem else 38) * _MiB
    weight_resident = resident_est <= resident_budget

    if weight_resident:
        vmem_est = resident_est
    else:
        vmem_est = (2 * tm * K * x_bytes + 2 * K * tn * w_bytes + 2 * tn * 4
                    + 2 * tm * tn * o_bytes + tm * tn * 4)
    vmem_cap_limit = (96 if big_vmem else 48) * _MiB
    vmem_limit = int(min(max(vmem_est + 8 * _MiB, 32 * _MiB), vmem_cap_limit))

    x2d = hidden_states.reshape(M, K)        # bitcast reshape; NO dtype cast here
    x_name = jnp.dtype(hidden_states.dtype).name
    w_name = jnp.dtype(weight_kn.dtype).name

    try:
        fn = _build_fn(M, K, N, tm, tn, x_name, w_name, out_dt.name, act,
                       weight_resident, weight_resident, vmem_limit)
        out2d = fn(x2d, weight_kn, bias2d)
    except Exception:
        # Fallback if single-buffered resident specs (pl.Buffered(1)) are not
        # supported by this jax build: plain double-buffered specs.
        vmem_limit_db = int(min(vmem_limit + K * N * w_bytes + N * 4, vmem_cap_limit))
        fn = _build_fn(M, K, N, tm, tn, x_name, w_name, out_dt.name, act,
                       weight_resident, False, vmem_limit_db)
        out2d = fn(x2d, weight_kn, bias2d)
    return out2d.reshape(B, S, N)


# --------------------------------------------------------------------------- reference / demo
def reference(hidden_states, weight_kn, bias):
    h = jnp.einsum("bsk,kn->bsn", hidden_states, weight_kn) + bias
    return h * 0.5 * (1.0 + jax.lax.erf(h / jnp.sqrt(2.0)))


if __name__ == "__main__":
    # Small BERT-like config: hidden_size=32, intermediate_size=128, batch=2, seq=8.
    B, S, H, I = 2, 8, 32, 128
    key = jax.random.PRNGKey(0)
    kx, kw, kb = jax.random.split(key, 3)

    hidden_states = jax.random.normal(kx, (B, S, H), dtype=jnp.float32)
    # Synthetic nn.Linear params in PyTorch layout: weight [out, in], bias [out].
    weight_oi = jax.random.normal(kw, (I, H), dtype=jnp.float32) * 0.02
    bias = jax.random.normal(kb, (I,), dtype=jnp.float32) * 0.02

    # One-time (model-init) weight transpose + bf16 cast, bias -> f32 [1, N].
    w_kn, b2d = prepare_params(weight_oi, bias)

    out = bert_intermediate(hidden_states, w_kn, b2d)   # default: exact erf GELU, bf16 out
    out = jax.block_until_ready(out)
    assert out.shape == (B, S, I)
    assert out.dtype == jnp.bfloat16

    # Reference with matching MXU numerics (bf16 operands, f32 accumulate/epilogue).
    xb = hidden_states.astype(jnp.bfloat16).astype(jnp.float32)
    wb = weight_oi.T.astype(jnp.bfloat16).astype(jnp.float32)
    ref_bf16 = reference(xb, wb, bias)
    assert jnp.allclose(out.astype(jnp.float32), ref_bf16, atol=5e-3, rtol=5e-2)

    # Full-f32 module reference; looser tolerance for the bf16 operand/output trade-off.
    ref_f32 = reference(hidden_states, weight_oi.T, bias)
    assert jnp.allclose(out.astype(jnp.float32), ref_f32, atol=2e-2, rtol=2e-2)

    # Optional fast epilogue (tanh-GELU -> EUP slot) for VALU-bound v6e/v7x use.
    out_tanh = jax.block_until_ready(
        bert_intermediate(hidden_states, w_kn, b2d, act="gelu_tanh"))
    assert jnp.allclose(out_tanh.astype(jnp.float32), ref_f32, atol=3e-2, rtol=3e-2)

    print("KERNEL_OK")
</pallas_src>

<mosaic_0001>
module attributes {stable_mosaic.version = 11 : i64} {
  func.func @kernel(%arg0: i32, %arg1: memref<16x32xf32, #tpu.memory_space<vmem>>, %arg2: memref<32x128xbf16, #tpu.memory_space<vmem>>, %arg3: memref<1x128xf32, #tpu.memory_space<vmem>>, %arg4: memref<16x128xbf16, #tpu.memory_space<vmem>>) attributes {dimension_semantics = [#tpu.dimension_semantics<parallel>], iteration_bounds = array<i64: 1>, scalar_prefetch = 0 : i64, scratch_operands = 0 : i64, tpu.core_type = #tpu.core_type<tc>, window_params = [{transform_indices = @transform_0, window_bounds = array<i64: 16, 32>}, {pipeline_mode = #tpu.pipeline_mode<synchronous>, transform_indices = @transform_1, window_bounds = array<i64: 32, 128>}, {pipeline_mode = #tpu.pipeline_mode<synchronous>, transform_indices = @transform_2, window_bounds = array<i64: 1, 128>}, {transform_indices = @transform_3, window_bounds = array<i64: 16, 128>}]} {
    %c0 = arith.constant 0 : index
    %c0_0 = arith.constant 0 : index
    %0 = vector.load %arg1[%c0, %c0_0] : memref<16x32xf32, #tpu.memory_space<vmem>>, vector<16x32xf32>
    %1 = arith.truncf %0 : vector<16x32xf32> to vector<16x32xbf16>
    %c0_1 = arith.constant 0 : index
    %c0_2 = arith.constant 0 : index
    %2 = vector.load %arg2[%c0_1, %c0_2] : memref<32x128xbf16, #tpu.memory_space<vmem>>, vector<32x128xbf16>
    %cst = arith.constant dense<0.000000e+00> : vector<16x128xf32>
    %3 = tpu.matmul %1, %2, %cst {dimension_numbers = #tpu.dot_dimension_numbers<[1], [0], [0], [1], [0, 0, 1, 1], [], []>} : vector<16x32xbf16>, vector<32x128xbf16>, vector<16x128xf32> -> vector<16x128xf32>
    %c0_3 = arith.constant 0 : index
    %c0_4 = arith.constant 0 : index
    %4 = vector.load %arg3[%c0_3, %c0_4] : memref<1x128xf32, #tpu.memory_space<vmem>>, vector<1x128xf32>
    %5 = vector.broadcast %4 : vector<1x128xf32> to vector<16x128xf32>
    %6 = arith.addf %3, %5 : vector<16x128xf32>
    %cst_5 = arith.constant 0.707106769 : f32
    %7 = vector.broadcast %cst_5 : f32 to vector<16x128xf32>
    %8 = arith.mulf %6, %7 : vector<16x128xf32>
    %9 = math.erf %8 : vector<16x128xf32>
    %cst_6 = arith.constant 1.000000e+00 : f32
    %10 = vector.broadcast %cst_6 : f32 to vector<16x128xf32>
    %11 = arith.addf %10, %9 : vector<16x128xf32>
    %cst_7 = arith.constant 5.000000e-01 : f32
    %12 = vector.broadcast %cst_7 : f32 to vector<16x128xf32>
    %13 = arith.mulf %12, %11 : vector<16x128xf32>
    %14 = arith.mulf %6, %13 : vector<16x128xf32>
    %15 = arith.truncf %14 : vector<16x128xf32> to vector<16x128xbf16>
    %c0_8 = arith.constant 0 : index
    %c0_9 = arith.constant 0 : index
    %16 = vector.load %arg4[%c0_8, %c0_9] : memref<16x128xbf16, #tpu.memory_space<vmem>>, vector<16x128xbf16>
    tpu.vector_store %arg4[%c0_8, %c0_9], %15 {strides = array<i32>} : memref<16x128xbf16, #tpu.memory_space<vmem>>, vector<16x128xbf16>,
    return
  }
  func.func @transform_0(%arg0: i32) -> (i32, i32) {
    %c0_i32 = arith.constant 0 : i32
    %c0_i32_0 = arith.constant 0 : i32
    return %arg0, %c0_i32 : i32, i32
  }
  func.func @transform_1(%arg0: i32) -> (i32, i32) {
    %c0_i32 = arith.constant 0 : i32
    %c0_i32_0 = arith.constant 0 : i32
    %c0_i32_1 = arith.constant 0 : i32
    return %c0_i32, %c0_i32_0 : i32, i32
  }
  func.func @transform_2(%arg0: i32) -> (i32, i32) {
    %c0_i32 = arith.constant 0 : i32
    %c0_i32_0 = arith.constant 0 : i32
    %c0_i32_1 = arith.constant 0 : i32
    return %c0_i32, %c0_i32_0 : i32, i32
  }
  func.func @transform_3(%arg0: i32) -> (i32, i32) {
    %c0_i32 = arith.constant 0 : i32
    %c0_i32_0 = arith.constant 0 : i32
    return %arg0, %c0_i32 : i32, i32
  }
}

module attributes {stable_mosaic.version = 11 : i64} {
  func.func @kernel(%arg0: i32, %arg1: memref<16x32xf32, #tpu.memory_space<vmem>>, %arg2: memref<32x128xbf16, #tpu.memory_space<vmem>>, %arg3: memref<1x128xf32, #tpu.memory_space<vmem>>, %arg4: memref<16x128xbf16, #tpu.memory_space<vmem>>) attributes {dimension_semantics = [#tpu.dimension_semantics<parallel>], iteration_bounds = array<i64: 1>, scalar_prefetch = 0 : i64, scratch_operands = 0 : i64, tpu.core_type = #tpu.core_type<tc>, window_params = [{transform_indices = @transform_0, window_bounds = array<i64: 16, 32>}, {pipeline_mode = #tpu.pipeline_mode<synchronous>, transform_indices = @transform_1, window_bounds = array<i64: 32, 128>}, {pipeline_mode = #tpu.pipeline_mode<synchronous>, transform_indices = @transform_2, window_bounds = array<i64: 1, 128>}, {transform_indices = @transform_3, window_bounds = array<i64: 16, 128>}]} {
    %c0 = arith.constant 0 : index
    %c0_0 = arith.constant 0 : index
    %0 = vector.load %arg1[%c0, %c0_0] : memref<16x32xf32, #tpu.memory_space<vmem>>, vector<16x32xf32>
    %1 = arith.truncf %0 : vector<16x32xf32> to vector<16x32xbf16>
    %c0_1 = arith.constant 0 : index
    %c0_2 = arith.constant 0 : index
    %2 = vector.load %arg2[%c0_1, %c0_2] : memref<32x128xbf16, #tpu.memory_space<vmem>>, vector<32x128xbf16>
    %cst = arith.constant dense<0.000000e+00> : vector<16x128xf32>
    %3 = tpu.matmul %1, %2, %cst {dimension_numbers = #tpu.dot_dimension_numbers<[1], [0], [0], [1], [0, 0, 1, 1], [], []>} : vector<16x32xbf16>, vector<32x128xbf16>, vector<16x128xf32> -> vector<16x128xf32>
    %c0_3 = arith.constant 0 : index
    %c0_4 = arith.constant 0 : index
    %4 = vector.load %arg3[%c0_3, %c0_4] : memref<1x128xf32, #tpu.memory_space<vmem>>, vector<1x128xf32>
    %5 = vector.broadcast %4 : vector<1x128xf32> to vector<16x128xf32>
    %6 = arith.addf %3, %5 : vector<16x128xf32>
    %cst_5 = arith.constant 0.707106769 : f32
    %7 = vector.broadcast %cst_5 : f32 to vector<16x128xf32>
    %8 = arith.mulf %6, %7 : vector<16x128xf32>
    %9 = math.erf %8 : vector<16x128xf32>
    %cst_6 = arith.constant 1.000000e+00 : f32
    %10 = vector.broadcast %cst_6 : f32 to vector<16x128xf32>
    %11 = arith.addf %10, %9 : vector<16x128xf32>
    %cst_7 = arith.constant 5.000000e-01 : f32
    %12 = vector.broadcast %cst_7 : f32 to vector<16x128xf32>
    %13 = arith.mulf %12, %11 : vector<16x128xf32>
    %14 = arith.mulf %6, %13 : vector<16x128xf32>
    %15 = arith.truncf %14 : vector<16x128xf32> to vector<16x128xbf16>
    %c0_8 = arith.constant 0 : index
    %c0_9 = arith.constant 0 : index
    %16 = vector.load %arg4[%c0_8, %c0_9] : memref<16x128xbf16, #tpu.memory_space<vmem>>, vector<16x128xbf16>
    tpu.vector_store %arg4[%c0_8, %c0_9], %15 {strides = array<i32>} : memref<16x128xbf16, #tpu.memory_space<vmem>>, vector<16x128xbf16>,
    return
  }
  func.func @transform_0(%arg0: i32) -> (i32, i32) {
    %c0_i32 = arith.constant 0 : i32
    %c0_i32_0 = arith.constant 0 : i32
    return %arg0, %c0_i32 : i32, i32
  }
  func.func @transform_1(%arg0: i32) -> (i32, i32) {
    %c0_i32 = arith.constant 0 : i32
    %c0_i32_0 = arith.constant 0 : i32
    %c0_i32_1 = arith.constant 0 : i32
    return %c0_i32, %c0_i32_0 : i32, i32
  }
  func.func @transform_2(%arg0: i32) -> (i32, i32) {
    %c0_i32 = arith.constant 0 : i32
    %c0_i32_0 = arith.constant 0 : i32
    %c0_i32_1 = arith.constant 0 : i32
    return %c0_i32, %c0_i32_0 : i32, i32
  }
  func.func @transform_3(%arg0: i32) -> (i32, i32) {
    %c0_i32 = arith.constant 0 : i32
    %c0_i32_0 = arith.constant 0 : i32
    return %arg0, %c0_i32 : i32, i32
  }
}

</mosaic_0001>

<bundles_post_ra>
// kernel: tpu_custom_call.1
= control target key start
LH: loop header
LB: loop body
LE: loop exit
PB: predicated region body
PF: predicated region fallthrough
CT: control target
= control target key end

     0   :  { %8 = vsyncpa [#allocation3], 0  ;;  %s338_s0 = inlined_call_operand.hbm [shape: f32[16,32], index: 0, kind: input, shape index: {}]   ;;  %s339_s1 = inlined_call_operand.hbm [shape: bf16[32,128], index: 1, kind: input, shape index: {}]   ;;  %s340_s2 = inlined_call_operand.vmem [shape: f32[1,128], index: 2, kind: input, shape index: {}]   ;;  %s341_s3 = inlined_call_operand.hbm [shape: bf16[16,128], index: 3, kind: output, shape index: {}]  }
   0x1   :  { %9 = vsyncpa [#allocation6], 0 }
   0x2   :  { %10 = vsyncpa [#allocation4], 0  ;;  %s264_s12 = smov [#allocation2]   ;;  %s192_s16 = scalar_lea.hbm %s338_s0, 256 }
   0x3   :  { %s16_s13 = sshll.u32 %s264_s12, 4  ;;  %p193_p0 = scmp.ne.s32.totalorder %s338_s0, %s192_s16  ;;  %s17_s13 = int_to_ptr.vmem [resolvable:$true] %s16_s13 }
   0x4   :  { %p196_p1 = scmp.lt.u32.totalorder %s192_s16, %s338_s0 }
   0x6   :  { %p198_p2 = pnand %p196_p1, %p193_p0 }
   0x8   :  { %201 = shalt.err (!%p198_p2)
}
   0x9   :  { %s202_s21 = scalar_lea.vmem %s17_s13, 256  ;;  %p207_p4 = scmp.lt.s32.totalorder %s17_s13, %s17_s13 }
   0xa   :  { %p203_p3 = scmp.ne.s32.totalorder %s17_s13, %s202_s21  ;;  %p208_p5 = scmp.lt.s32.totalorder %s202_s21, %s202_s21 }
   0xc   :  { %p209_p6 = por %p208_p5, %p207_p4 }
   0xe   :  { %p210_p7 = pnand %p209_p6, %p203_p3 }
  0x10   :  { %213 = shalt.err (!%p210_p7)
}
  0x11   :  { %s265_s22 = smov 128   ;;  %s266_s23 = smov 8  }
  0x12   :  { %22 = dma.hbm_to_vmem [thread:$0]  %s338_s0, 256, %s17_s13, [#allocation3], %s265_s22, %s265_s22, %s266_s23  }
  0x13   :  { %s267_s26 = smov [#allocation5]   ;;  %s214_s30 = scalar_lea.hbm %s339_s1, 256 }
  0x14   :  { %s28_s27 = sshll.u32 %s267_s26, 4  ;;  %p215_p8 = scmp.ne.s32.totalorder %s339_s1, %s214_s30  ;;  %s29_s27 = int_to_ptr.vmem [resolvable:$true] %s28_s27 }
  0x15   :  { %p218_p9 = scmp.lt.u32.totalorder %s214_s30, %s339_s1 }
  0x17   :  { %p220_p10 = pnand %p218_p9, %p215_p8 }
  0x19   :  { %223 = shalt.err (!%p220_p10)
}
  0x1a   :  { %s224_s8 = scalar_lea.vmem %s29_s27, 256  ;;  %p229_p12 = scmp.lt.s32.totalorder %s29_s27, %s29_s27 }
  0x1b   :  { %p225_p11 = scmp.ne.s32.totalorder %s29_s27, %s224_s8  ;;  %p230_p13 = scmp.lt.s32.totalorder %s224_s8, %s224_s8 }
  0x1d   :  { %p231_p0 = por %p230_p13, %p229_p12 }
  0x1f   :  { %p232_p1 = pnand %p231_p0, %p225_p11 }
  0x21   :  { %235 = shalt.err (!%p232_p1)
}
  0x22   :  { %s268_s0 = smov 64   ;;  %s269_s9 = smov 4  }
  0x23   :  { %34 = dma.hbm_to_vmem [thread:$0]  %s339_s1, 256, %s29_s27, [#allocation6], %s268_s0, %s268_s0, %s269_s9  }
  0x24   :  { %258 = dma.done.wait [#allocation3], 256  }
  0x25   :  { %259 = vsyncadd [#allocation3], 4294967040 }
  0x26   :  { %260 = dma.done.wait [#allocation6], 256  }
  0x27   :  { %261 = vsyncadd [#allocation6], 4294967040  ;;  %v270_v0 = vmov 0.0   ;;  %vm271_vm0 = vmmov 0   ;;  %v186_v1 = vld [vmem:[#allocation5] sm:$0xff]   ;;  %v187_v2 = vld [vmem:[#allocation5 + $0x8] sm:$0xff]  }
  0x28   :  { %169 = vmatprep.subr.bf16.mxu0 %v270_v0  ;;  %173 = vmatprep.mubr.msk.bf16.mxu0 %vm271_vm0, %v270_v0  ;;  %v44_v3 = vld [vmem:[#allocation2] sm:$0xff]  ;;  %v45_v4 = vld [vmem:[#allocation2 + $0x8] sm:$0xff]  ;;  %vm70_vm1 = vcmask 261120   ;;  %s272_s13 = smov [#allocation7]  }
  0x29   :  { %170 = vmatpush3.bf16.msra.mxu0 %v186_v1  ;;  %v46_v5 = vpack.c.bf16 %v45_v4, %v44_v3  ;;  %v153_v6 = vld [vmem:[%s340_s2] ss:$0 sm:$0xff]  ;;  %s140_s14 = sshll.u32 %s272_s13, 4  ;;  %s141_s14 = int_to_ptr.vmem [resolvable:$true] %s140_s14 }
  0x2a   :  { %171 = vmatprep.subr.bf16.mxu0 %v270_v0  ;;  %s236_s2 = scalar_lea.vmem %s141_s14, 128  ;;  %p241_p3 = scmp.lt.s32.totalorder %s141_s14, %s141_s14 }
  0x2b   :  { %p237_p2 = scmp.ne.s32.totalorder %s141_s14, %s236_s2  ;;  %p242_p4 = scmp.lt.s32.totalorder %s236_s2, %s236_s2 }
  0x2d   :  { %172 = vmatpush3.bf16.msra.mxu0 %v187_v2  ;;  %p243_p5 = por %p242_p4, %p241_p3 }
  0x2f   :  { %p244_p6 = pnand %p243_p5, %p237_p2 }
  0x30   :  { %174 = vmatmul.mubr.msk.bf16.vlgmr.msra.gmra.mrb[0].mxu0 %vm70_vm1, %v46_v5 }
 0x103   :  { %v108_v7 = vpop.f32.mrb[0].mxu0 }
 0x104   :  { %v109_v8 = vadd.f32 %v153_v6, %v108_v7  ;;  %v175_v9 = vpop.f32.mrb[1].mxu0 }
 0x105   :  { %v111_v10 = vpop.f32.mrb[2].mxu0 }
 0x106   :  { %v115_v11 = vmul.f32 0.70710677, %v109_v8  ;;  %v112_v12 = vadd.f32 %v153_v6, %v111_v10  ;;  %v176_v13 = vpop.f32.mrb[3].mxu0 }
 0x108   :  { %188 = verf.f32 %v115_v11  ;;  %v116_v14 = vmul.f32 0.70710677, %v112_v12 }
 0x10a   :  { %190 = verf.f32 %v116_v14 }
 0x112   :  { %v189_v15 = vpop.eup %188 }
 0x113   :  { %v119_v16 = vadd.f32 1.0, %v189_v15 }
 0x114   :  { %v191_v17 = vpop.eup %190 }
 0x115   :  { %v121_v18 = vmul.f32 0.5, %v119_v16  ;;  %v120_v19 = vadd.f32 1.0, %v191_v17 }
 0x117   :  { %v122_v20 = vmul.f32 0.5, %v120_v19  ;;  %v123_v21 = vmul.f32 %v121_v18, %v109_v8 }
 0x119   :  { %v124_v22 = vmul.f32 %v122_v20, %v112_v12 }
 0x11b   :  { %v164_v23 = vpack.c.bf16 %v124_v22, %v123_v21 }
 0x11d   :  { %165 = vst [vmem:[#allocation7] sm:$0xff] %v164_v23  }
 0x11e   :  { %247 = shalt.err (!%p244_p6)
}
 0x11f   :  { %s248_s17 = scalar_lea.hbm %s341_s3, 128 }
 0x120   :  { %p249_p7 = scmp.ne.s32.totalorder %s341_s3, %s248_s17  ;;  %p252_p8 = scmp.lt.u32.totalorder %s248_s17, %s341_s3 }
 0x122   :  { %p254_p9 = pnand %p252_p8, %p249_p7 }
 0x124   :  { %257 = shalt.err (!%p254_p9)
}
 0x125   :  { %146 = dma.vmem_to_hbm [thread:$0]  %s141_s14, 128, %s341_s3, [#allocation4], %s268_s0, %s268_s0, %s269_s9  }
 0x126   :  { %262 = dma.done.wait [#allocation4], 128  }
 0x127   :  { %263 = vsyncadd [#allocation4], 4294967168 }
 0x128   :  { %150 = vsyncpa [#allocation3], 1 }
 0x129   :  { %151 = vsyncpa [#allocation6], 1 }
 0x12a   :  { %152 = vsyncpa [#allocation4], 1 }

// kernel: tpu_custom_call.1
= control target key start
LH: loop header
LB: loop body
LE: loop exit
PB: predicated region body
PF: predicated region fallthrough
CT: control target
= control target key end

     0   :  { %8 = vsyncpa [#allocation3], 0  ;;  %s338_s0 = inlined_call_operand.hbm [shape: f32[16,32], index: 0, kind: input, shape index: {}]   ;;  %s339_s1 = inlined_call_operand.hbm [shape: bf16[32,128], index: 1, kind: input, shape index: {}]   ;;  %s340_s2 = inlined_call_operand.vmem [shape: f32[1,128], index: 2, kind: input, shape index: {}]   ;;  %s341_s3 = inlined_call_operand.hbm [shape: bf16[16,128], index: 3, kind: output, shape index: {}]  }
   0x1   :  { %9 = vsyncpa [#allocation6], 0 }
   0x2   :  { %10 = vsyncpa [#allocation4], 0  ;;  %s264_s12 = smov [#allocation2]   ;;  %s192_s16 = scalar_lea.hbm %s338_s0, 256 }
   0x3   :  { %s16_s13 = sshll.u32 %s264_s12, 4  ;;  %p193_p0 = scmp.ne.s32.totalorder %s338_s0, %s192_s16  ;;  %s17_s13 = int_to_ptr.vmem [resolvable:$true] %s16_s13 }
   0x4   :  { %p196_p1 = scmp.lt.u32.totalorder %s192_s16, %s338_s0 }
   0x6   :  { %p198_p2 = pnand %p196_p1, %p193_p0 }
   0x8   :  { %201 = shalt.err (!%p198_p2)
}
   0x9   :  { %s202_s21 = scalar_lea.vmem %s17_s13, 256  ;;  %p207_p4 = scmp.lt.s32.totalorder %s17_s13, %s17_s13 }
   0xa   :  { %p203_p3 = scmp.ne.s32.totalorder %s17_s13, %s202_s21  ;;  %p208_p5 = scmp.lt.s32.totalorder %s202_s21, %s202_s21 }
   0xc   :  { %p209_p6 = por %p208_p5, %p207_p4 }
   0xe   :  { %p210_p7 = pnand %p209_p6, %p203_p3 }
  0x10   :  { %213 = shalt.err (!%p210_p7)
}
  0x11   :  { %s265_s22 = smov 128   ;;  %s266_s23 = smov 8  }
  0x12   :  { %22 = dma.hbm_to_vmem [thread:$0]  %s338_s0, 256, %s17_s13, [#allocation3], %s265_s22, %s265_s22, %s266_s23  }
  0x13   :  { %s267_s26 = smov [#allocation5]   ;;  %s214_s30 = scalar_lea.hbm %s339_s1, 256 }
  0x14   :  { %s28_s27 = sshll.u32 %s267_s26, 4  ;;  %p215_p8 = scmp.ne.s32.totalorder %s339_s1, %s214_s30  ;;  %s29_s27 = int_to_ptr.vmem [resolvable:$true] %s28_s27 }
  0x15   :  { %p218_p9 = scmp.lt.u32.totalorder %s214_s30, %s339_s1 }
  0x17   :  { %p220_p10 = pnand %p218_p9, %p215_p8 }
  0x19   :  { %223 = shalt.err (!%p220_p10)
}
  0x1a   :  { %s224_s8 = scalar_lea.vmem %s29_s27, 256  ;;  %p229_p12 = scmp.lt.s32.totalorder %s29_s27, %s29_s27 }
  0x1b   :  { %p225_p11 = scmp.ne.s32.totalorder %s29_s27, %s224_s8  ;;  %p230_p13 = scmp.lt.s32.totalorder %s224_s8, %s224_s8 }
  0x1d   :  { %p231_p0 = por %p230_p13, %p229_p12 }
  0x1f   :  { %p232_p1 = pnand %p231_p0, %p225_p11 }
  0x21   :  { %235 = shalt.err (!%p232_p1)
}
  0x22   :  { %s268_s0 = smov 64   ;;  %s269_s9 = smov 4  }
  0x23   :  { %34 = dma.hbm_to_vmem [thread:$0]  %s339_s1, 256, %s29_s27, [#allocation6], %s268_s0, %s268_s0, %s269_s9  }
  0x24   :  { %258 = dma.done.wait [#allocation3], 256  }
  0x25   :  { %259 = vsyncadd [#allocation3], 4294967040 }
  0x26   :  { %260 = dma.done.wait [#allocation6], 256  }
  0x27   :  { %261 = vsyncadd [#allocation6], 4294967040  ;;  %v270_v0 = vmov 0.0   ;;  %vm271_vm0 = vmmov 0   ;;  %v186_v1 = vld [vmem:[#allocation5] sm:$0xff]   ;;  %v187_v2 = vld [vmem:[#allocation5 + $0x8] sm:$0xff]  }
  0x28   :  { %169 = vmatprep.subr.bf16.mxu0 %v270_v0  ;;  %173 = vmatprep.mubr.msk.bf16.mxu0 %vm271_vm0, %v270_v0  ;;  %v44_v3 = vld [vmem:[#allocation2] sm:$0xff]  ;;  %v45_v4 = vld [vmem:[#allocation2 + $0x8] sm:$0xff]  ;;  %vm70_vm1 = vcmask 261120   ;;  %s272_s13 = smov [#allocation7]  }
  0x29   :  { %170 = vmatpush3.bf16.msra.mxu0 %v186_v1  ;;  %v46_v5 = vpack.c.bf16 %v45_v4, %v44_v3  ;;  %v153_v6 = vld [vmem:[%s340_s2] ss:$0 sm:$0xff]  ;;  %s140_s14 = sshll.u32 %s272_s13, 4  ;;  %s141_s14 = int_to_ptr.vmem [resolvable:$true] %s140_s14 }
  0x2a   :  { %171 = vmatprep.subr.bf16.mxu0 %v270_v0  ;;  %s236_s2 = scalar_lea.vmem %s141_s14, 128  ;;  %p241_p3 = scmp.lt.s32.totalorder %s141_s14, %s141_s14 }
  0x2b   :  { %p237_p2 = scmp.ne.s32.totalorder %s141_s14, %s236_s2  ;;  %p242_p4 = scmp.lt.s32.totalorder %s236_s2, %s236_s2 }
  0x2d   :  { %172 = vmatpush3.bf16.msra.mxu0 %v187_v2  ;;  %p243_p5 = por %p242_p4, %p241_p3 }
  0x2f   :  { %p244_p6 = pnand %p243_p5, %p237_p2 }
  0x30   :  { %174 = vmatmul.mubr.msk.bf16.vlgmr.msra.gmra.mrb[0].mxu0 %vm70_vm1, %v46_v5 }
 0x103   :  { %v108_v7 = vpop.f32.mrb[0].mxu0 }
 0x104   :  { %v109_v8 = vadd.f32 %v153_v6, %v108_v7  ;;  %v175_v9 = vpop.f32.mrb[1].mxu0 }
 0x105   :  { %v111_v10 = vpop.f32.mrb[2].mxu0 }
 0x106   :  { %v115_v11 = vmul.f32 0.70710677, %v109_v8  ;;  %v112_v12 = vadd.f32 %v153_v6, %v111_v10  ;;  %v176_v13 = vpop.f32.mrb[3].mxu0 }
 0x108   :  { %188 = verf.f32 %v115_v11  ;;  %v116_v14 = vmul.f32 0.70710677, %v112_v12 }
 0x10a   :  { %190 = verf.f32 %v116_v14 }
 0x112   :  { %v189_v15 = vpop.eup %188 }
 0x113   :  { %v119_v16 = vadd.f32 1.0, %v189_v15 }
 0x114   :  { %v191_v17 = vpop.eup %190 }
 0x115   :  { %v121_v18 = vmul.f32 0.5, %v119_v16  ;;  %v120_v19 = vadd.f32 1.0, %v191_v17 }
 0x117   :  { %v122_v20 = vmul.f32 0.5, %v120_v19  ;;  %v123_v21 = vmul.f32 %v121_v18, %v109_v8 }
 0x119   :  { %v124_v22 = vmul.f32 %v122_v20, %v112_v12 }
 0x11b   :  { %v164_v23 = vpack.c.bf16 %v124_v22, %v123_v21 }
 0x11d   :  { %165 = vst [vmem:[#allocation7] sm:$0xff] %v164_v23  }
 0x11e   :  { %247 = shalt.err (!%p244_p6)
}
 0x11f   :  { %s248_s17 = scalar_lea.hbm %s341_s3, 128 }
 0x120   :  { %p249_p7 = scmp.ne.s32.totalorder %s341_s3, %s248_s17  ;;  %p252_p8 = scmp.lt.u32.totalorder %s248_s17, %s341_s3 }
 0x122   :  { %p254_p9 = pnand %p252_p8, %p249_p7 }
 0x124   :  { %257 = shalt.err (!%p254_p9)
}
 0x125   :  { %146 = dma.vmem_to_hbm [thread:$0]  %s141_s14, 128, %s341_s3, [#allocation4], %s268_s0, %s268_s0, %s269_s9  }
 0x126   :  { %262 = dma.done.wait [#allocation4], 128  }
 0x127   :  { %263 = vsyncadd [#allocation4], 4294967168 }
 0x128   :  { %150 = vsyncpa [#allocation3], 1 }
 0x129   :  { %151 = vsyncpa [#allocation6], 1 }
 0x12a   :  { %152 = vsyncpa [#allocation4], 1 }

</bundles_post_ra>
